<compile_context>
chip_gen: v7x
topology: tpu7x:2x2x1
jax: 0.10.0
libtpu: 0.0.40
codegen_flags: <defaults>
</compile_context>

<pallas_src>
import jax
import jax.numpy as jnp
from jax.experimental import pallas as pl
from jax.experimental.pallas import tpu as pltpu


def fused_conv_pool_kernel(p_ref, w_ref, o_ref, t1_ref, tpad_ref):
    # p_ref:    (1, OH*OW, 32)  im2col patches (bias column = 1.0, rest zero-pad)
    # w_ref:    (32, OC)        weights with bias folded in as row K=27
    # o_ref:    (1, OH, OW, OC) final fused output (NHWC block)
    # t1_ref:   VMEM (OH*OW, OC)       conv result scratch
    # tpad_ref: VMEM (OH+2, OW+2, OC)  zero-padded conv result for the pool
    _, OH, OW, OC = o_ref.shape

    # --- conv (+ bias, folded into w_ref) as one small MXU matmul ---
    t1_ref[...] = jnp.dot(p_ref[0], w_ref[...], preferred_element_type=jnp.float32)

    # --- build zero-padded t1 entirely in VMEM (no HBM round trip / jnp.pad) ---
    tpad_ref[...] = jnp.zeros_like(tpad_ref)
    for oh in range(OH):
        tpad_ref[1 + oh, 1:OW + 1, :] = t1_ref[oh * OW:(oh + 1) * OW, :]

    # --- separable 3x3 window sum: 3 column taps + 3 row taps (6 shifts, not 9) ---
    rs = (tpad_ref[:, 0:OW, :]
          + tpad_ref[:, 1:OW + 1, :]
          + tpad_ref[:, 2:OW + 2, :])                 # (OH+2, OW, OC)
    s = rs[0:OH] + rs[1:OH + 1] + rs[2:OH + 2]        # (OH, OW, OC) 3x3 sums

    t1c = tpad_ref[1:OH + 1, 1:OW + 1, :]             # center taps == t1 (OH, OW, OC)

    # t2 = s/9 ; t3 = t2/11 ; t5 = clamp(t3, 0, 6) ; out = t1*t5/6
    t5 = jnp.clip(s * (1.0 / 99.0), 0.0, 6.0)
    o_ref[0, :, :, :] = t1c * t5 * (1.0 / 6.0)


def model_forward(x_nchw, w_oihw, b_o):
    N, C, H, W = x_nchw.shape
    OC, IC, KH, KW = w_oihw.shape
    stride, pad = 3, 1
    OH = (H + 2 * pad - KH) // stride + 1
    OW = (W + 2 * pad - KW) // stride + 1
    # stride == kernel and padded extent divides exactly -> non-overlapping blocks
    assert stride == KH == KW
    assert (H + 2 * pad) == stride * OH and (W + 2 * pad) == stride * OW

    K = KH * KW * IC          # 27
    Kp = 32                   # K padded to 32 (row 27 carries the bias)
    f32 = jnp.float32

    # --- minimal host glue: pad + space-to-depth im2col (reshape/transpose) ---
    xp = jnp.pad(x_nchw.astype(f32), ((0, 0), (0, 0), (pad, pad), (pad, pad)))
    pat = (xp.reshape(N, C, OH, KH, OW, KW)
             .transpose(0, 2, 4, 3, 5, 1)             # (N, OH, OW, KH, KW, C)
             .reshape(N, OH * OW, K))
    p32 = jnp.concatenate(
        [pat, jnp.ones((N, OH * OW, 1), f32), jnp.zeros((N, OH * OW, Kp - K - 1), f32)],
        axis=2)                                        # (N, OH*OW, 32)

    w2 = jnp.transpose(w_oihw.astype(f32), (2, 3, 1, 0)).reshape(K, OC)
    w32 = jnp.concatenate(
        [w2, b_o.reshape(1, OC).astype(f32), jnp.zeros((Kp - K - 1, OC), f32)],
        axis=0)                                        # (32, OC)

    # --- single fused Pallas kernel: conv + bias + avgpool + clamp/mul/div ---
    out_nhwc = pl.pallas_call(
        fused_conv_pool_kernel,
        out_shape=jax.ShapeDtypeStruct((N, OH, OW, OC), f32),
        grid=(N,),
        in_specs=[
            pl.BlockSpec((1, OH * OW, Kp), lambda n: (n, 0, 0)),
            pl.BlockSpec((Kp, OC), lambda n: (0, 0)),
        ],
        out_specs=pl.BlockSpec((1, OH, OW, OC), lambda n: (n, 0, 0, 0)),
        scratch_shapes=[
            pltpu.VMEM((OH * OW, OC), f32),            # t1
            pltpu.VMEM((OH + 2, OW + 2, OC), f32),     # zero-padded t1 for pooling
        ],
        compiler_params=pltpu.CompilerParams(dimension_semantics=("arbitrary",)),
    )(p32, w32)

    return jnp.transpose(out_nhwc, (0, 3, 1, 2))       # back to NCHW


if __name__ == "__main__":
    key = jax.random.PRNGKey(0)
    k1, k2, k3 = jax.random.split(key, 3)

    # input shaped like the PyTorch script: (1, 3, 28, 28)
    x = jax.random.normal(k1, (1, 3, 28, 28), dtype=jnp.float32)

    # deterministic Conv2d params: weight (16,3,3,3), bias (16,)
    fan_in = 3 * 3 * 3
    bound = 1.0 / (fan_in ** 0.5)
    w = jax.random.uniform(k2, (16, 3, 3, 3), minval=-bound, maxval=bound, dtype=jnp.float32)
    b = jax.random.uniform(k3, (16,), minval=-bound, maxval=bound, dtype=jnp.float32)

    out = jax.block_until_ready(jax.jit(model_forward)(x, w, b))

    # plain-JAX reference check
    ref_t1 = jax.lax.conv_general_dilated(
        x, w, window_strides=(3, 3), padding=((1, 1), (1, 1)),
        dimension_numbers=("NCHW", "OIHW", "NCHW"),
        precision=jax.lax.Precision.HIGHEST) + b.reshape(1, -1, 1, 1)
    ref_t2 = jax.lax.reduce_window(
        jnp.pad(ref_t1, ((0, 0), (0, 0), (1, 1), (1, 1))),
        0.0, jax.lax.add, (1, 1, 3, 3), (1, 1, 1, 1), "VALID") / 9.0
    ref = ref_t1 * jnp.clip(ref_t2 / 11.0, 0.0, 6.0) / 6.0

    assert out.shape == (1, 16, 10, 10)
    if not jnp.allclose(out, ref, atol=1e-2, rtol=1e-2):
        raise AssertionError("Pallas result mismatch vs reference")
    print("KERNEL_OK")
</pallas_src>

<mosaic_0001>
module attributes {stable_mosaic.version = 11 : i64} {
  func.func @fused_conv_pool_kernel(%arg0: i32, %arg1: memref<1x100x32xf32, #tpu.memory_space<vmem>>, %arg2: memref<32x16xf32, #tpu.memory_space<vmem>>, %arg3: memref<1x10x10x16xf32, #tpu.memory_space<vmem>>, %arg4: memref<100x16xf32, #tpu.memory_space<vmem>>, %arg5: memref<12x12x16xf32, #tpu.memory_space<vmem>>) attributes {dimension_semantics = [#tpu.dimension_semantics<arbitrary>], iteration_bounds = array<i64: 1>, scalar_prefetch = 0 : i64, scratch_operands = 2 : i64, tpu.core_type = #tpu.core_type<tc>, window_params = [{transform_indices = @transform_0, window_bounds = array<i64: 1, 100, 32>}, {pipeline_mode = #tpu.pipeline_mode<synchronous>, transform_indices = @transform_1, window_bounds = array<i64: 32, 16>}, {transform_indices = @transform_2, window_bounds = array<i64: 1, 10, 10, 16>}]} {
    %c0 = arith.constant 0 : index
    %c0_0 = arith.constant 0 : index
    %c0_1 = arith.constant 0 : index
    %0 = vector.load %arg1[%c0, %c0_0, %c0_1] : memref<1x100x32xf32, #tpu.memory_space<vmem>>, vector<1x100x32xf32>
    %1 = vector.shape_cast %0 : vector<1x100x32xf32> to vector<100x32xf32>
    %c0_2 = arith.constant 0 : index
    %c0_3 = arith.constant 0 : index
    %2 = vector.load %arg2[%c0_2, %c0_3] : memref<32x16xf32, #tpu.memory_space<vmem>>, vector<32x16xf32>
    %cst = arith.constant dense<0.000000e+00> : vector<100x16xf32>
    %3 = tpu.matmul %1, %2, %cst {dimension_numbers = #tpu.dot_dimension_numbers<[1], [0], [0], [1], [0, 0, 1, 1], [], []>} : vector<100x32xf32>, vector<32x16xf32>, vector<100x16xf32> -> vector<100x16xf32>
    %c0_4 = arith.constant 0 : index
    %c0_5 = arith.constant 0 : index
    %4 = vector.load %arg4[%c0_4, %c0_5] : memref<100x16xf32, #tpu.memory_space<vmem>>, vector<100x16xf32>
    tpu.vector_store %arg4[%c0_4, %c0_5], %3 {strides = array<i32>} : memref<100x16xf32, #tpu.memory_space<vmem>>, vector<100x16xf32>,
    %cst_6 = arith.constant 0.000000e+00 : f32
    %5 = vector.broadcast %cst_6 : f32 to vector<12x12x16xf32>
    %c0_7 = arith.constant 0 : index
    %c0_8 = arith.constant 0 : index
    %c0_9 = arith.constant 0 : index
    %6 = vector.load %arg5[%c0_7, %c0_8, %c0_9] : memref<12x12x16xf32, #tpu.memory_space<vmem>>, vector<12x12x16xf32>
    tpu.vector_store %arg5[%c0_7, %c0_8, %c0_9], %5 {strides = array<i32>} : memref<12x12x16xf32, #tpu.memory_space<vmem>>, vector<12x12x16xf32>,
    %c0_10 = arith.constant 0 : index
    %c0_11 = arith.constant 0 : index
    %7 = vector.load %arg4[%c0_10, %c0_11] : memref<100x16xf32, #tpu.memory_space<vmem>>, vector<10x16xf32>
    %c1 = arith.constant 1 : index
    %c1_12 = arith.constant 1 : index
    %c0_13 = arith.constant 0 : index
    %8 = vector.load %arg5[%c1, %c1_12, %c0_13] : memref<12x12x16xf32, #tpu.memory_space<vmem>>, vector<1x10x16xf32>
    %9 = vector.shape_cast %8 : vector<1x10x16xf32> to vector<10x16xf32>
    %10 = vector.shape_cast %7 : vector<10x16xf32> to vector<1x10x16xf32>
    tpu.vector_store %arg5[%c1, %c1_12, %c0_13], %10 {strides = array<i32>} : memref<12x12x16xf32, #tpu.memory_space<vmem>>, vector<1x10x16xf32>,
    %c10 = arith.constant 10 : index
    %c0_14 = arith.constant 0 : index
    %11 = vector.load %arg4[%c10, %c0_14] : memref<100x16xf32, #tpu.memory_space<vmem>>, vector<10x16xf32>
    %c2 = arith.constant 2 : index
    %c1_15 = arith.constant 1 : index
    %c0_16 = arith.constant 0 : index
    %12 = vector.load %arg5[%c2, %c1_15, %c0_16] : memref<12x12x16xf32, #tpu.memory_space<vmem>>, vector<1x10x16xf32>
    %13 = vector.shape_cast %12 : vector<1x10x16xf32> to vector<10x16xf32>
    %14 = vector.shape_cast %11 : vector<10x16xf32> to vector<1x10x16xf32>
    tpu.vector_store %arg5[%c2, %c1_15, %c0_16], %14 {strides = array<i32>} : memref<12x12x16xf32, #tpu.memory_space<vmem>>, vector<1x10x16xf32>,
    %c20 = arith.constant 20 : index
    %c0_17 = arith.constant 0 : index
    %15 = vector.load %arg4[%c20, %c0_17] : memref<100x16xf32, #tpu.memory_space<vmem>>, vector<10x16xf32>
    %c3 = arith.constant 3 : index
    %c1_18 = arith.constant 1 : index
    %c0_19 = arith.constant 0 : index
    %16 = vector.load %arg5[%c3, %c1_18, %c0_19] : memref<12x12x16xf32, #tpu.memory_space<vmem>>, vector<1x10x16xf32>
    %17 = vector.shape_cast %16 : vector<1x10x16xf32> to vector<10x16xf32>
    %18 = vector.shape_cast %15 : vector<10x16xf32> to vector<1x10x16xf32>
    tpu.vector_store %arg5[%c3, %c1_18, %c0_19], %18 {strides = array<i32>} : memref<12x12x16xf32, #tpu.memory_space<vmem>>, vector<1x10x16xf32>,
    %c30 = arith.constant 30 : index
    %c0_20 = arith.constant 0 : index
    %19 = vector.load %arg4[%c30, %c0_20] : memref<100x16xf32, #tpu.memory_space<vmem>>, vector<10x16xf32>
    %c4 = arith.constant 4 : index
    %c1_21 = arith.constant 1 : index
    %c0_22 = arith.constant 0 : index
    %20 = vector.load %arg5[%c4, %c1_21, %c0_22] : memref<12x12x16xf32, #tpu.memory_space<vmem>>, vector<1x10x16xf32>
    %21 = vector.shape_cast %20 : vector<1x10x16xf32> to vector<10x16xf32>
    %22 = vector.shape_cast %19 : vector<10x16xf32> to vector<1x10x16xf32>
    tpu.vector_store %arg5[%c4, %c1_21, %c0_22], %22 {strides = array<i32>} : memref<12x12x16xf32, #tpu.memory_space<vmem>>, vector<1x10x16xf32>,
    %c40 = arith.constant 40 : index
    %c0_23 = arith.constant 0 : index
    %23 = vector.load %arg4[%c40, %c0_23] : memref<100x16xf32, #tpu.memory_space<vmem>>, vector<10x16xf32>
    %c5 = arith.constant 5 : index
    %c1_24 = arith.constant 1 : index
    %c0_25 = arith.constant 0 : index
    %24 = vector.load %arg5[%c5, %c1_24, %c0_25] : memref<12x12x16xf32, #tpu.memory_space<vmem>>, vector<1x10x16xf32>
    %25 = vector.shape_cast %24 : vector<1x10x16xf32> to vector<10x16xf32>
    %26 = vector.shape_cast %23 : vector<10x16xf32> to vector<1x10x16xf32>
    tpu.vector_store %arg5[%c5, %c1_24, %c0_25], %26 {strides = array<i32>} : memref<12x12x16xf32, #tpu.memory_space<vmem>>, vector<1x10x16xf32>,
    %c50 = arith.constant 50 : index
    %c0_26 = arith.constant 0 : index
    %27 = vector.load %arg4[%c50, %c0_26] : memref<100x16xf32, #tpu.memory_space<vmem>>, vector<10x16xf32>
    %c6 = arith.constant 6 : index
    %c1_27 = arith.constant 1 : index
    %c0_28 = arith.constant 0 : index
    %28 = vector.load %arg5[%c6, %c1_27, %c0_28] : memref<12x12x16xf32, #tpu.memory_space<vmem>>, vector<1x10x16xf32>
    %29 = vector.shape_cast %28 : vector<1x10x16xf32> to vector<10x16xf32>
    %30 = vector.shape_cast %27 : vector<10x16xf32> to vector<1x10x16xf32>
    tpu.vector_store %arg5[%c6, %c1_27, %c0_28], %30 {strides = array<i32>} : memref<12x12x16xf32, #tpu.memory_space<vmem>>, vector<1x10x16xf32>,
    %c60 = arith.constant 60 : index
    %c0_29 = arith.constant 0 : index
    %31 = vector.load %arg4[%c60, %c0_29] : memref<100x16xf32, #tpu.memory_space<vmem>>, vector<10x16xf32>
    %c7 = arith.constant 7 : index
    %c1_30 = arith.constant 1 : index
    %c0_31 = arith.constant 0 : index
    %32 = vector.load %arg5[%c7, %c1_30, %c0_31] : memref<12x12x16xf32, #tpu.memory_space<vmem>>, vector<1x10x16xf32>
    %33 = vector.shape_cast %32 : vector<1x10x16xf32> to vector<10x16xf32>
    %34 = vector.shape_cast %31 : vector<10x16xf32> to vector<1x10x16xf32>
    tpu.vector_store %arg5[%c7, %c1_30, %c0_31], %34 {strides = array<i32>} : memref<12x12x16xf32, #tpu.memory_space<vmem>>, vector<1x10x16xf32>,
    %c70 = arith.constant 70 : index
    %c0_32 = arith.constant 0 : index
    %35 = vector.load %arg4[%c70, %c0_32] : memref<100x16xf32, #tpu.memory_space<vmem>>, vector<10x16xf32>
    %c8 = arith.constant 8 : index
    %c1_33 = arith.constant 1 : index
    %c0_34 = arith.constant 0 : index
    %36 = vector.load %arg5[%c8, %c1_33, %c0_34] : memref<12x12x16xf32, #tpu.memory_space<vmem>>, vector<1x10x16xf32>
    %37 = vector.shape_cast %36 : vector<1x10x16xf32> to vector<10x16xf32>
    %38 = vector.shape_cast %35 : vector<10x16xf32> to vector<1x10x16xf32>
    tpu.vector_store %arg5[%c8, %c1_33, %c0_34], %38 {strides = array<i32>} : memref<12x12x16xf32, #tpu.memory_space<vmem>>, vector<1x10x16xf32>,
    %c80 = arith.constant 80 : index
    %c0_35 = arith.constant 0 : index
    %39 = vector.load %arg4[%c80, %c0_35] : memref<100x16xf32, #tpu.memory_space<vmem>>, vector<10x16xf32>
    %c9 = arith.constant 9 : index
    %c1_36 = arith.constant 1 : index
    %c0_37 = arith.constant 0 : index
    %40 = vector.load %arg5[%c9, %c1_36, %c0_37] : memref<12x12x16xf32, #tpu.memory_space<vmem>>, vector<1x10x16xf32>
    %41 = vector.shape_cast %40 : vector<1x10x16xf32> to vector<10x16xf32>
    %42 = vector.shape_cast %39 : vector<10x16xf32> to vector<1x10x16xf32>
    tpu.vector_store %arg5[%c9, %c1_36, %c0_37], %42 {strides = array<i32>} : memref<12x12x16xf32, #tpu.memory_space<vmem>>, vector<1x10x16xf32>,
    %c90 = arith.constant 90 : index
    %c0_38 = arith.constant 0 : index
    %43 = vector.load %arg4[%c90, %c0_38] : memref<100x16xf32, #tpu.memory_space<vmem>>, vector<10x16xf32>
    %c10_39 = arith.constant 10 : index
    %c1_40 = arith.constant 1 : index
    %c0_41 = arith.constant 0 : index
    %44 = vector.load %arg5[%c10_39, %c1_40, %c0_41] : memref<12x12x16xf32, #tpu.memory_space<vmem>>, vector<1x10x16xf32>
    %45 = vector.shape_cast %44 : vector<1x10x16xf32> to vector<10x16xf32>
    %46 = vector.shape_cast %43 : vector<10x16xf32> to vector<1x10x16xf32>
    tpu.vector_store %arg5[%c10_39, %c1_40, %c0_41], %46 {strides = array<i32>} : memref<12x12x16xf32, #tpu.memory_space<vmem>>, vector<1x10x16xf32>,
    %c0_42 = arith.constant 0 : index
    %c0_43 = arith.constant 0 : index
    %c0_44 = arith.constant 0 : index
    %47 = vector.load %arg5[%c0_42, %c0_43, %c0_44] : memref<12x12x16xf32, #tpu.memory_space<vmem>>, vector<12x10x16xf32>
    %c0_45 = arith.constant 0 : index
    %c1_46 = arith.constant 1 : index
    %c0_47 = arith.constant 0 : index
    %48 = vector.load %arg5[%c0_45, %c1_46, %c0_47] : memref<12x12x16xf32, #tpu.memory_space<vmem>>, vector<12x10x16xf32>
    %49 = arith.addf %47, %48 : vector<12x10x16xf32>
    %c0_48 = arith.constant 0 : index
    %c2_49 = arith.constant 2 : index
    %c0_50 = arith.constant 0 : index
    %50 = vector.load %arg5[%c0_48, %c2_49, %c0_50] : memref<12x12x16xf32, #tpu.memory_space<vmem>>, vector<12x10x16xf32>
    %51 = arith.addf %49, %50 : vector<12x10x16xf32>
    %52 = vector.extract_strided_slice %51 {offsets = [0, 0, 0], sizes = [10, 10, 16], strides = [1, 1, 1]} : vector<12x10x16xf32> to vector<10x10x16xf32>
    %53 = vector.extract_strided_slice %51 {offsets = [1, 0, 0], sizes = [10, 10, 16], strides = [1, 1, 1]} : vector<12x10x16xf32> to vector<10x10x16xf32>
    %54 = arith.addf %52, %53 : vector<10x10x16xf32>
    %55 = vector.extract_strided_slice %51 {offsets = [2, 0, 0], sizes = [10, 10, 16], strides = [1, 1, 1]} : vector<12x10x16xf32> to vector<10x10x16xf32>
    %56 = arith.addf %54, %55 : vector<10x10x16xf32>
    %c1_51 = arith.constant 1 : index
    %c1_52 = arith.constant 1 : index
    %c0_53 = arith.constant 0 : index
    %57 = vector.load %arg5[%c1_51, %c1_52, %c0_53] : memref<12x12x16xf32, #tpu.memory_space<vmem>>, vector<10x10x16xf32>
    %cst_54 = arith.constant 0.0101010101 : f32
    %58 = vector.broadcast %cst_54 : f32 to vector<10x10x16xf32>
    %59 = arith.mulf %56, %58 : vector<10x10x16xf32>
    %cst_55 = arith.constant 0.000000e+00 : f32
    %cst_56 = arith.constant 6.000000e+00 : f32
    %60 = vector.broadcast %cst_55 : f32 to vector<10x10x16xf32>
    %61 = arith.maximumf %60, %59 : vector<10x10x16xf32>
    %62 = vector.broadcast %cst_56 : f32 to vector<10x10x16xf32>
    %63 = arith.minimumf %62, %61 : vector<10x10x16xf32>
    %64 = arith.mulf %57, %63 : vector<10x10x16xf32>
    %cst_57 = arith.constant 0.166666672 : f32
    %65 = vector.broadcast %cst_57 : f32 to vector<10x10x16xf32>
    %66 = arith.mulf %64, %65 : vector<10x10x16xf32>
    %c0_58 = arith.constant 0 : index
    %c0_59 = arith.constant 0 : index
    %c0_60 = arith.constant 0 : index
    %c0_61 = arith.constant 0 : index
    %67 = vector.load %arg3[%c0_58, %c0_59, %c0_60, %c0_61] : memref<1x10x10x16xf32, #tpu.memory_space<vmem>>, vector<1x10x10x16xf32>
    %68 = vector.shape_cast %67 : vector<1x10x10x16xf32> to vector<10x10x16xf32>
    %69 = vector.shape_cast %66 : vector<10x10x16xf32> to vector<1x10x10x16xf32>
    tpu.vector_store %arg3[%c0_58, %c0_59, %c0_60, %c0_61], %69 {strides = array<i32>} : memref<1x10x10x16xf32, #tpu.memory_space<vmem>>, vector<1x10x10x16xf32>,
    return
  }
  func.func @transform_0(%arg0: i32) -> (i32, i32, i32) {
    %c0_i32 = arith.constant 0 : i32
    %c0_i32_0 = arith.constant 0 : i32
    %c0_i32_1 = arith.constant 0 : i32
    return %arg0, %c0_i32, %c0_i32_0 : i32, i32, i32
  }
  func.func @transform_1(%arg0: i32) -> (i32, i32) {
    %c0_i32 = arith.constant 0 : i32
    %c0_i32_0 = arith.constant 0 : i32
    %c0_i32_1 = arith.constant 0 : i32
    return %c0_i32, %c0_i32_0 : i32, i32
  }
  func.func @transform_2(%arg0: i32) -> (i32, i32, i32, i32) {
    %c0_i32 = arith.constant 0 : i32
    %c0_i32_0 = arith.constant 0 : i32
    %c0_i32_1 = arith.constant 0 : i32
    %c0_i32_2 = arith.constant 0 : i32
    return %arg0, %c0_i32, %c0_i32_0, %c0_i32_1 : i32, i32, i32, i32
  }
}

</mosaic_0001>

<bundles_post_ra>
// kernel: model_forward.1
= control target key start
LH: loop header
LB: loop body
LE: loop exit
PB: predicated region body
PF: predicated region fallthrough
CT: control target
= control target key end

     0   :  { %v682_v0 = vmov 0.0|0.0   ;;  %vm683_vm0 = vmmov 0   ;;  %v684_v6 = vmov 0.0   ;;  %vm28_vm1 = vcmask 261120   ;;  %s1051_s1 = inlined_call_operand.vmem [shape: f32[32,16], index: 1, kind: input, shape index: {}]   ;;  %s1052_s0 = inlined_call_operand.vmem [shape: f32[1,100,32], index: 0, kind: input, shape index: {}]   ;;  %s1053_s2 = inlined_call_operand.vmem [shape: f32[1,10,10,16], index: 2, kind: output, shape index: {}]  }
   0x1   :  { %669 = vmatprep.subr.bf16.mxu0 %v682_v0  ;;  %675 = vmatprep.subr.bf16.mxu1 %v682_v0  ;;  %v24_v1 = vld [vmem:[%s1051_s1] sm:$0xff]  ;;  %v25_v2 = vld [vmem:[%s1051_s1 + $0x8] sm:$0xff]  ;;  %v26_v3 = vld [vmem:[%s1051_s1 + $0x10] sm:$0xff]  ;;  %vm198_vm2 = vcmask 130048   ;;  %vm211_vm3 = vcmask 125952   ;;  %vm241_vm4 = vcmask 123904  }
   0x2   :  { %v670_v4 = vpack.c.bf16 %v25_v2, %v24_v1  ;;  %v27_v5 = vld [vmem:[%s1051_s1 + $0x18] sm:$0xff]  ;;  %630 = vmatprep.mubr.msk.f32.mxu0 %vm683_vm0, %v684_v6  ;;  %651 = vmatprep.mubr.msk.f32.mxu1 %vm683_vm0, %v684_v6  ;;  %v11_v8 = vld [vmem:[%s1052_s0] sm:$0xff]  ;;  %v12_v10 = vld [vmem:[%s1052_s0 + $0x8] sm:$0xff]  ;;  %215 = vst.msk [vmem:[#allocation3 + $0x10] sm:$0xff] %vm198_vm2, %v684_v6 }
   0x3   :  { %v673_v7 = vpack.c.bf16 %v27_v5, %v26_v3  ;;  %v18_v9 = vld [vmem:[%s1052_s0 + $0x38] sm:$0xff]  ;;  %v19_v11 = vld [vmem:[%s1052_s0 + $0x40] sm:$0xff]  ;;  %v13_v12 = vld [vmem:[%s1052_s0 + $0x10] sm:$0xff]  ;;  %213 = vst.msk [vmem:[#allocation3] sm:$0xff] %vm198_vm2, %v684_v6 }
   0x4   :  { %671 = vmatpush3.bf16.msra.mxu0 %v670_v4  ;;  %677 = vmatpush3.bf16.msra.mxu1 %v670_v4  ;;  %v20_v13 = vld [vmem:[%s1052_s0 + $0x48] sm:$0xff]  ;;  %v14_v14 = vld [vmem:[%s1052_s0 + $0x18] sm:$0xff]  ;;  %v21_v15 = vld [vmem:[%s1052_s0 + $0x50] sm:$0xff]  ;;  %217 = vst.msk [vmem:[#allocation3 + $0x20] sm:$0xff] %vm198_vm2, %v684_v6 }
   0x5   :  { %672 = vmatprep.subr.bf16.mxu0 %v682_v0  ;;  %676 = vmatprep.subr.bf16.mxu1 %v682_v0  ;;  %v15_v16 = vld [vmem:[%s1052_s0 + $0x20] sm:$0xff]  ;;  %v22_v17 = vld [vmem:[%s1052_s0 + $0x58] sm:$0xff]  ;;  %v16_v18 = vld [vmem:[%s1052_s0 + $0x28] sm:$0xff]  ;;  %219 = vst.msk [vmem:[#allocation3 + $0x30] sm:$0xff] %vm198_vm2, %v684_v6 }
   0x6   :  { %v23_v19 = vld [vmem:[%s1052_s0 + $0x60] sm:$0xf]  ;;  %v17_v20 = vld [vmem:[%s1052_s0 + $0x30] sm:$0xff]  ;;  %221 = vst.msk [vmem:[#allocation3 + $0x40] sm:$0xff] %vm198_vm2, %v684_v6  ;;  %223 = vst.msk [vmem:[#allocation3 + $0x50] sm:$0xff] %vm198_vm2, %v684_v6 }
   0x7   :  { %225 = vst.msk [vmem:[#allocation3 + $0x60] sm:$0xff] %vm198_vm2, %v684_v6  ;;  %227 = vst.msk [vmem:[#allocation3 + $0x70] sm:$0xff] %vm198_vm2, %v684_v6 }
   0x8   :  { %674 = vmatpush3.bf16.msra.mxu0 %v673_v7  ;;  %678 = vmatpush3.bf16.msra.mxu1 %v673_v7  ;;  %229 = vst.msk [vmem:[#allocation3 + $0x80] sm:$0xff] %vm198_vm2, %v684_v6  ;;  %231 = vst.msk [vmem:[#allocation3 + $0x90] sm:$0xff] %vm198_vm2, %v684_v6 }
   0x9   :  { %233 = vst.msk [vmem:[#allocation3 + $0xa0] sm:$0xff] %vm198_vm2, %v684_v6  ;;  %235 = vst.msk [vmem:[#allocation3 + $0xb0] sm:$0xff] %vm198_vm2, %v684_v6 }
   0xa   :  { %216 = vst.msk [vmem:[#allocation3 + $0x18] sm:$0xf] %vm211_vm3, %v684_v6  ;;  %214 = vst.msk [vmem:[#allocation3 + $0x8] sm:$0xf] %vm211_vm3, %v684_v6  ;;  %v288_v42 = vld [vmem:[#allocation3] sm:$0xff] }
   0xb   :  { %631 = vmatmul.mubr.msk.f32.vlgmr.msra.gmra.mrb[0].mxu0 %vm28_vm1, %v11_v8  ;;  %652 = vmatmul.mubr.msk.f32.vlgmr.msra.gmra.mrb[0].mxu1 %vm28_vm1, %v18_v9  ;;  %218 = vst.msk [vmem:[#allocation3 + $0x28] sm:$0xf] %vm211_vm3, %v684_v6  ;;  %220 = vst.msk [vmem:[#allocation3 + $0x38] sm:$0xf] %vm211_vm3, %v684_v6 }
   0xc   :  { %633 = vmatprep.mubr.msk.f32.mxu0 %vm683_vm0, %v684_v6  ;;  %654 = vmatprep.mubr.msk.f32.mxu1 %vm683_vm0, %v684_v6  ;;  %222 = vst.msk [vmem:[#allocation3 + $0x48] sm:$0xf] %vm211_vm3, %v684_v6  ;;  %224 = vst.msk [vmem:[#allocation3 + $0x58] sm:$0xf] %vm211_vm3, %v684_v6 }
   0xd   :  { %226 = vst.msk [vmem:[#allocation3 + $0x68] sm:$0xf] %vm211_vm3, %v684_v6  ;;  %228 = vst.msk [vmem:[#allocation3 + $0x78] sm:$0xf] %vm211_vm3, %v684_v6 }
   0xe   :  { %230 = vst.msk [vmem:[#allocation3 + $0x88] sm:$0xf] %vm211_vm3, %v684_v6  ;;  %232 = vst.msk [vmem:[#allocation3 + $0x98] sm:$0xf] %vm211_vm3, %v684_v6 }
   0xf   :  { %634 = vmatmul.mubr.msk.f32.gmra.mrb[2].mxu0 %vm28_vm1, %v12_v10  ;;  %655 = vmatmul.mubr.msk.f32.gmra.mrb[2].mxu1 %vm28_vm1, %v19_v11  ;;  %234 = vst.msk [vmem:[#allocation3 + $0xa8] sm:$0xf] %vm211_vm3, %v684_v6  ;;  %236 = vst.msk [vmem:[#allocation3 + $0xb8] sm:$0xf] %vm211_vm3, %v684_v6 }
  0x10   :  { %636 = vmatprep.mubr.msk.f32.mxu0 %vm683_vm0, %v684_v6  ;;  %657 = vmatprep.mubr.msk.f32.mxu1 %vm683_vm0, %v684_v6  ;;  %v310_v11 = vld [vmem:[#allocation3 + $0xb0] sm:$0xff] }
  0x11   :  { %v289_v43 = vld [vmem:[#allocation3 + $0x8] sm:$0x3]  ;;  %v361_v2 = vld [vmem:[#allocation3 + $0xa] sm:$0x3] }
  0x12   :  { %v312_v46 = vld [vmem:[#allocation3 + $0x1] sm:$0xff]  ;;  %v313_v47 = vld [vmem:[#allocation3 + $0x9] sm:$0x3] }
  0x13   :  { %637 = vmatmul.mubr.msk.f32.gmra.mrb[4].mxu0 %vm28_vm1, %v13_v12  ;;  %658 = vmatmul.mubr.msk.f32.gmra.mrb[4].mxu1 %vm28_vm1, %v20_v13  ;;  %v336_v58 = vadd.f32 %v312_v46, %v288_v42  ;;  %v337_v60 = vadd.f32 %v313_v47, %v289_v43  ;;  %v360_v62 = vld [vmem:[#allocation3 + $0x2] sm:$0xff] }
  0x14   :  { %639 = vmatprep.mubr.msk.f32.mxu0 %vm683_vm0, %v684_v6  ;;  %660 = vmatprep.mubr.msk.f32.mxu1 %vm683_vm0, %v684_v6 }
  0x16   :  { %v334_v12 = vld [vmem:[#allocation3 + $0xb1] sm:$0xff] }
  0x17   :  { %640 = vmatmul.mubr.msk.f32.gmra.mrb[6].mxu0 %vm28_vm1, %v14_v14  ;;  %661 = vmatmul.mubr.msk.f32.gmra.mrb[6].mxu1 %vm28_vm1, %v21_v15  ;;  %v385_v14 = vadd.f32 %v361_v2, %v337_v60 }
  0x18   :  { %642 = vmatprep.mubr.msk.f32.mxu0 %vm683_vm0, %v684_v6  ;;  %663 = vmatprep.mubr.msk.f32.mxu1 %vm683_vm0, %v684_v6 }
  0x1b   :  { %643 = vmatmul.mubr.msk.f32.gmra.mrb[8].mxu0 %vm28_vm1, %v15_v16  ;;  %664 = vmatmul.mubr.msk.f32.gmra.mrb[8].mxu1 %vm28_vm1, %v22_v17 }
  0x1c   :  { %645 = vmatprep.mubr.msk.f32.mxu0 %vm683_vm0, %v684_v6  ;;  %666 = vmatprep.mubr.msk.f32.mxu1 %vm683_vm0, %v684_v6 }
  0x1f   :  { %646 = vmatmul.mubr.msk.f32.gmra.mrb[10].mxu0 %vm28_vm1, %v16_v18  ;;  %667 = vmatmul.mubr.msk.f32.gmra.mrb[10].mxu1 %vm28_vm1, %v23_v19 }
  0x20   :  { %648 = vmatprep.mubr.msk.f32.mxu0 %vm683_vm0, %v684_v6  ;;  %v384_v6 = vadd.f32 %v360_v62, %v336_v58 }
  0x23   :  { %649 = vmatmul.mubr.msk.f32.gmra.mrb[12].mxu0 %vm28_vm1, %v17_v20 }
  0xde   :  { %v134_v21 = vpop.f32.mrb[0].mxu0  ;;  %v169_v22 = vpop.f32.mrb[0].mxu1 }
  0xdf   :  { %199 = vst.msk [vmem:[#allocation2] sm:$0xff] %vm198_vm2, %v134_v21  ;;  %v632_v23 = vpop.f32.mrb[1].mxu0  ;;  %206 = vst.msk [vmem:[#allocation2 + $0x38] sm:$0xff] %vm198_vm2, %v169_v22  ;;  %v653_v24 = vpop.f32.mrb[1].mxu1 }
  0xe2   :  { %v139_v25 = vpop.f32.mrb[2].mxu0  ;;  %v174_v26 = vpop.f32.mrb[2].mxu1 }
  0xe3   :  { %200 = vst.msk [vmem:[#allocation2 + $0x8] sm:$0xff] %vm198_vm2, %v139_v25  ;;  %207 = vst.msk [vmem:[#allocation2 + $0x40] sm:$0xff] %vm198_vm2, %v174_v26  ;;  %v635_v27 = vpop.f32.mrb[3].mxu0  ;;  %v656_v28 = vpop.f32.mrb[3].mxu1 }
  0xe4   :  { %v311_v28 = vld [vmem:[#allocation3 + $0xb8] sm:$0x3] }
  0xe6   :  { %v237_v29 = vld [vmem:[#allocation2] sm:$0xff]  ;;  %v264_v30 = vld [vmem:[#allocation2 + $0x3a] sm:$0x3]  ;;  %v144_v31 = vpop.f32.mrb[4].mxu0  ;;  %v179_v32 = vpop.f32.mrb[4].mxu1 }
  0xe7   :  { %240 = vst.msk [vmem:[#allocation3 + $0x11] sm:$0xff] %vm198_vm2, %v237_v29  ;;  %201 = vst.msk [vmem:[#allocation2 + $0x10] sm:$0xff] %vm198_vm2, %v144_v31  ;;  %v638_v33 = vpop.f32.mrb[5].mxu0  ;;  %v659_v34 = vpop.f32.mrb[5].mxu1  ;;  %v335_v29 = vld [vmem:[#allocation3 + $0xb9] sm:$0x3] }
  0xe8   :  { %267 = vst.msk [vmem:[#allocation3 + $0x69] sm:$0x3] %vm241_vm4, %v264_v30  ;;  %v359_v60 = vadd.f32 %v335_v29, %v311_v28 }
  0xe9   :  { %208 = vst.msk [vmem:[#allocation2 + $0x48] sm:$0xff] %vm198_vm2, %v179_v32 }
  0xea   :  { %v238_v35 = vld [vmem:[#allocation2 + $0x8] sm:$0x3]  ;;  %v268_v36 = vld [vmem:[#allocation2 + $0x3c] sm:$0xff]  ;;  %v269_v37 = vld [vmem:[#allocation2 + $0x44] sm:$0x3]  ;;  %v149_v38 = vpop.f32.mrb[6].mxu0 }
  0xeb   :  { %242 = vst.msk [vmem:[#allocation3 + $0x19] sm:$0x3] %vm241_vm4, %v238_v35  ;;  %272 = vst.msk [vmem:[#allocation3 + $0x79] sm:$0x3] %vm241_vm4, %v269_v37  ;;  %v641_v39 = vpop.f32.mrb[7].mxu0  ;;  %v184_v40 = vpop.f32.mrb[6].mxu1 }
  0xec   :  { %271 = vst.msk [vmem:[#allocation3 + $0x71] sm:$0xff] %vm198_vm2, %v268_v36  ;;  %202 = vst.msk [vmem:[#allocation2 + $0x18] sm:$0xff] %vm198_vm2, %v149_v38  ;;  %v662_v41 = vpop.f32.mrb[7].mxu1  ;;  %v382_v35 = vld [vmem:[#allocation3 + $0xb2] sm:$0xff] }
  0xed   :  { %209 = vst.msk [vmem:[#allocation2 + $0x50] sm:$0xff] %vm198_vm2, %v184_v40  ;;  %v358_v41 = vadd.f32 %v334_v12, %v310_v11 }
  0xee   :  { %v154_v44 = vpop.f32.mrb[8].mxu0  ;;  %v189_v45 = vpop.f32.mrb[8].mxu1  ;;  %v243_v48 = vld [vmem:[#allocation2 + $0xa] sm:$0xff]  ;;  %v244_v50 = vld [vmem:[#allocation2 + $0x12] sm:$0x3]  ;;  %v290_v54 = vld [vmem:[#allocation3 + $0x10] sm:$0xff] }
  0xef   :  { %203 = vst.msk [vmem:[#allocation2 + $0x20] sm:$0xff] %vm198_vm2, %v154_v44  ;;  %210 = vst.msk [vmem:[#allocation2 + $0x58] sm:$0xff] %vm198_vm2, %v189_v45  ;;  %v644_v49 = vpop.f32.mrb[9].mxu0  ;;  %v665_v53 = vpop.f32.mrb[9].mxu1  ;;  %v854_v55 = vld [vmem:[#allocation3 + $0x11] sm:$0xff] }
  0xf0   :  { %246 = vst.msk [vmem:[#allocation3 + $0x21] sm:$0xff] %vm198_vm2, %v243_v48  ;;  %v273_v51 = vld [vmem:[#allocation2 + $0x46] sm:$0xff]  ;;  %v274_v52 = vld [vmem:[#allocation2 + $0x4e] sm:$0x3]  ;;  %v338_v1 = vadd.f32 %v854_v55, %v290_v54 }
  0xf1   :  { %247 = vst.msk [vmem:[#allocation3 + $0x29] sm:$0x3] %vm241_vm4, %v244_v50  ;;  %277 = vst.msk [vmem:[#allocation3 + $0x89] sm:$0x3] %vm241_vm4, %v274_v52 }
  0xf2   :  { %276 = vst.msk [vmem:[#allocation3 + $0x81] sm:$0xff] %vm198_vm2, %v273_v51  ;;  %v291_v56 = vld [vmem:[#allocation3 + $0x18] sm:$0x3]  ;;  %v159_v59 = vpop.f32.mrb[10].mxu0  ;;  %v194_v0 = vpop.f32.mrb[10].mxu1 }
  0xf3   :  { %v315_v57 = vld [vmem:[#allocation3 + $0x19] sm:$0x3]  ;;  %204 = vst.msk [vmem:[#allocation2 + $0x28] sm:$0xff] %vm198_vm2, %v159_v59  ;;  %v647_v3 = vpop.f32.mrb[11].mxu0  ;;  %v668_v5 = vpop.f32.mrb[11].mxu1  ;;  %v248_v8 = vld [vmem:[#allocation2 + $0x14] sm:$0xff] }
  0xf4   :  { %v339_v61 = vadd.f32 %v315_v57, %v291_v56  ;;  %v362_v63 = vld [vmem:[#allocation3 + $0x12] sm:$0xff]  ;;  %212 = vst.msk [vmem:[#allocation2 + $0x60] sm:$0xf] %vm211_vm3, %v194_v0  ;;  %v363_v4 = vld [vmem:[#allocation3 + $0x1a] sm:$0x3]  ;;  %v278_v10 = vld [vmem:[#allocation2 + $0x50] sm:$0xff] }
  0xf5   :  { %v862_v7 = vadd.f32 %v362_v63, %v338_v1  ;;  %v249_v9 = vld [vmem:[#allocation2 + $0x1c] sm:$0x3]  ;;  %251 = vst.msk [vmem:[#allocation3 + $0x31] sm:$0xff] %vm198_vm2, %v248_v8  ;;  %281 = vst.msk [vmem:[#allocation3 + $0x91] sm:$0xff] %vm198_vm2, %v278_v10  ;;  %v303_v31 = vld [vmem:[#allocation3 + $0x78] sm:$0x3] }
  0xf6   :  { %v164_v13 = vpop.f32.mrb[12].mxu0  ;;  %v864_v15 = vadd.f32 %v363_v4, %v339_v61  ;;  %252 = vst.msk [vmem:[#allocation3 + $0x39] sm:$0x3] %vm241_vm4, %v249_v9  ;;  %v253_v18 = vld [vmem:[#allocation2 + $0x1e] sm:$0xff]  ;;  %v254_v45 = vld [vmem:[#allocation2 + $0x26] sm:$0x3]  ;;  %v896_v4 = vadd.f32 %v382_v35, %v358_v41 }
  0xf7   :  { %v292_v16 = vld [vmem:[#allocation3 + $0x20] sm:$0xff]  ;;  %205 = vst.msk [vmem:[#allocation2 + $0x30] sm:$0xff] %vm198_vm2, %v164_v13  ;;  %v650_v19 = vpop.f32.mrb[13].mxu0  ;;  %v302_v20 = vld [vmem:[#allocation3 + $0x70] sm:$0xff]  ;;  %256 = vst.msk [vmem:[#allocation3 + $0x41] sm:$0xff] %vm198_vm2, %v253_v18  ;;  %v408_v30 = vadd.f32 %v862_v7, %v384_v6 }
  0xf8   :  { %v866_v17 = vld [vmem:[#allocation3 + $0x21] sm:$0xff]  ;;  %v317_v22 = vld [vmem:[#allocation3 + $0x29] sm:$0x3]  ;;  %v874_v24 = vld [vmem:[#allocation3 + $0x71] sm:$0xff]  ;;  %v409_v36 = vadd.f32 %v864_v15, %v385_v14  ;;  %257 = vst.msk [vmem:[#allocation3 + $0x49] sm:$0x3] %vm241_vm4, %v254_v45 }
  0xf9   :  { %v293_v21 = vld [vmem:[#allocation3 + $0x28] sm:$0x3]  ;;  %v340_v23 = vadd.f32 %v866_v17, %v292_v16  ;;  %v304_v27 = vld [vmem:[#allocation3 + $0x80] sm:$0xff]  ;;  %v365_v32 = vld [vmem:[#allocation3 + $0x2a] sm:$0x3]  ;;  %v350_v42 = vadd.f32 %v874_v24, %v302_v20 }
  0xfa   :  { %v341_v25 = vadd.f32 %v317_v22, %v293_v21  ;;  %v364_v26 = vld [vmem:[#allocation3 + $0x22] sm:$0xff]  ;;  %v327_v37 = vld [vmem:[#allocation3 + $0x79] sm:$0x3]  ;;  %v279_v46 = vld [vmem:[#allocation2 + $0x58] sm:$0x3] }
  0xfb   :  { %v877_v33 = vadd.f32 %v364_v26, %v340_v23  ;;  %v879_v34 = vld [vmem:[#allocation3 + $0x81] sm:$0xff]  ;;  %v329_v40 = vld [vmem:[#allocation3 + $0x89] sm:$0x3]  ;;  %v374_v48 = vld [vmem:[#allocation3 + $0x72] sm:$0xff]  ;;  %282 = vst.msk [vmem:[#allocation3 + $0x99] sm:$0x3] %vm241_vm4, %v279_v46  ;;  %v351_v62 = vadd.f32 %v327_v37, %v303_v31 }
  0xfc   :  { %v882_v38 = vadd.f32 %v365_v32, %v341_v25  ;;  %v305_v39 = vld [vmem:[#allocation3 + $0x88] sm:$0x3]  ;;  %v352_v44 = vadd.f32 %v879_v34, %v304_v27  ;;  %v258_v47 = vld [vmem:[#allocation2 + $0x28] sm:$0xff]  ;;  %v377_v50 = vld [vmem:[#allocation3 + $0x8a] sm:$0x3]  ;;  %v898_v5 = vadd.f32 %v374_v48, %v350_v42 }
  0xfd   :  { %v428_v43 = vadd.f32 %v408_v30, %v877_v33  ;;  %261 = vst.msk [vmem:[#allocation3 + $0x51] sm:$0xff] %vm198_vm2, %v258_v47  ;;  %v283_v51 = vld [vmem:[#allocation2 + $0x5a] sm:$0xff]  ;;  %v284_v52 = vld [vmem:[#allocation2 + $0x62] sm:$0x3]  ;;  %v353_v56 = vadd.f32 %v329_v40, %v305_v39  ;;  %v376_v0 = vld [vmem:[#allocation3 + $0x82] sm:$0xff]  ;;  %v410_v13 = vadd.f32 %v877_v33, %v862_v7 }
  0xfe   :  { %v429_v49 = vadd.f32 %v409_v36, %v882_v38  ;;  %v375_v53 = vld [vmem:[#allocation3 + $0x7a] sm:$0x3]  ;;  %v294_v57 = vld [vmem:[#allocation3 + $0x30] sm:$0xff]  ;;  %v295_v58 = vld [vmem:[#allocation3 + $0x38] sm:$0x3]  ;;  %286 = vst.msk [vmem:[#allocation3 + $0xa1] sm:$0xff] %vm198_vm2, %v283_v51  ;;  %v900_v8 = vadd.f32 %v376_v0, %v352_v44  ;;  %v411_v14 = vadd.f32 %v882_v38, %v864_v15 }
  0xff   :  { %v468_v54 = vmul.f32 0.01010101, %v428_v43  ;;  %v891_v59 = vld [vmem:[#allocation3 + $0x31] sm:$0xff]  ;;  %287 = vst.msk [vmem:[#allocation3 + $0xa9] sm:$0x3] %vm241_vm4, %v284_v52  ;;  %v296_v19 = vld [vmem:[#allocation3 + $0x40] sm:$0xff]  ;;  %v910_v23 = vadd.f32 %v377_v50, %v353_v56  ;;  %v914_v7 = vadd.f32 %v375_v53, %v351_v62 }
 0x100   :  { %v383_v61 = vld [vmem:[#allocation3 + $0xba] sm:$0x3]  ;;  %v469_v63 = vmul.f32 0.01010101, %v429_v49  ;;  %v342_v2 = vadd.f32 %v891_v59, %v294_v57  ;;  %v366_v3 = vld [vmem:[#allocation3 + $0x32] sm:$0xff]  ;;  %v908_v20 = vld [vmem:[#allocation3 + $0x41] sm:$0xff]  ;;  %v422_v32 = vadd.f32 %v900_v8, %v898_v5 }
 0x101   :  { %v319_v1 = vld [vmem:[#allocation3 + $0x39] sm:$0x3]  ;;  %v488_v6 = vmax.f32 %v468_v54, 0.0  ;;  %v306_v11 = vld [vmem:[#allocation3 + $0x90] sm:$0xff]  ;;  %v259_v21 = vld [vmem:[#allocation2 + $0x30] sm:$0x3]  ;;  %v344_v26 = vadd.f32 %v908_v20, %v296_v19  ;;  %v916_v30 = vadd.f32 %v383_v61, %v359_v60  ;;  %v423_v47 = vadd.f32 %v910_v23, %v914_v7 }
 0x102   :  { %v343_v9 = vadd.f32 %v319_v1, %v295_v58  ;;  %v367_v10 = vld [vmem:[#allocation3 + $0x3a] sm:$0x3]  ;;  %v902_v12 = vld [vmem:[#allocation3 + $0x91] sm:$0xff]  ;;  %v489_v16 = vmax.f32 %v469_v63, 0.0  ;;  %v390_v18 = vadd.f32 %v366_v3, %v342_v2  ;;  %262 = vst.msk [vmem:[#allocation3 + $0x59] sm:$0x3] %vm241_vm4, %v259_v21 }
 0x103   :  { %v508_v22 = vmin.f32 %v488_v6, 6.0  ;;  %v263_v27 = vld [vmem:[#allocation2 + $0x32] sm:$0xff]  ;;  %v449_v28 = vld [vmem:[#allocation3 + $0x19] sm:$0x3]  ;;  %v354_v36 = vadd.f32 %v902_v12, %v306_v11  ;;  %v297_v37 = vld [vmem:[#allocation3 + $0x48] sm:$0x3] }
 0x104   :  { %v391_v25 = vadd.f32 %v367_v10, %v343_v9  ;;  %v509_v29 = vmin.f32 %v489_v16, 6.0  ;;  %v430_v15 = vadd.f32 %v410_v13, %v390_v18  ;;  %266 = vst.msk [vmem:[#allocation3 + $0x61] sm:$0xff] %vm198_vm2, %v263_v27  ;;  %v321_v39 = vld [vmem:[#allocation3 + $0x49] sm:$0x3]  ;;  %v307_v49 = vld [vmem:[#allocation3 + $0x98] sm:$0x3] }
 0x105   :  { %v528_v31 = vmul.f32 %v508_v22, %v854_v55  ;;  %v368_v40 = vld [vmem:[#allocation3 + $0x42] sm:$0xff]  ;;  %v345_v43 = vadd.f32 %v321_v39, %v297_v37  ;;  %v369_v44 = vld [vmem:[#allocation3 + $0x4a] sm:$0x3]  ;;  %v412_v55 = vadd.f32 %v390_v18, %v877_v33  ;;  %v331_v54 = vld [vmem:[#allocation3 + $0x99] sm:$0x3] }
 0x106   :  { %v431_v35 = vadd.f32 %v411_v14, %v391_v25  ;;  %v529_v41 = vmul.f32 %v509_v29, %v449_v28  ;;  %v470_v42 = vmul.f32 0.01010101, %v430_v15  ;;  %v923_v45 = vadd.f32 %v368_v40, %v344_v26  ;;  %v378_v56 = vld [vmem:[#allocation3 + $0x92] sm:$0xff]  ;;  %v379_v33 = vld [vmem:[#allocation3 + $0x9a] sm:$0x3]  ;;  %v308_v3 = vld [vmem:[#allocation3 + $0xa0] sm:$0xff] }
 0x107   :  { %v548_v46 = vmul.f32 0.16666667, %v528_v31  ;;  %v413_v51 = vadd.f32 %v391_v25, %v882_v38  ;;  %v929_v53 = vadd.f32 %v369_v44, %v345_v43  ;;  %v355_v60 = vadd.f32 %v331_v54, %v307_v49  ;;  %v298_v62 = vld [vmem:[#allocation3 + $0x50] sm:$0xff]  ;;  %v309_v6 = vld [vmem:[#allocation3 + $0xa8] sm:$0x3] }
 0x108   :  { %v471_v48 = vmul.f32 0.01010101, %v431_v35  ;;  %v549_v50 = vmul.f32 0.16666667, %v529_v41  ;;  %v490_v52 = vmax.f32 %v470_v42, 0.0  ;;  %v432_v58 = vadd.f32 %v412_v55, %v923_v45  ;;  %v947_v2 = vld [vmem:[#allocation3 + $0x51] sm:$0xff] }
 0x109   :  { %568 = vst.msk [vmem:[%s1053_s2] sm:$0xff] %vm198_vm2, %v548_v46  ;;  %v402_v61 = vadd.f32 %v378_v56, %v354_v36  ;;  %v941_v63 = vadd.f32 %v923_v45, %v390_v18  ;;  %v944_v0 = vadd.f32 %v929_v53, %v391_v25  ;;  %v433_v1 = vadd.f32 %v413_v51, %v929_v53  ;;  %v949_v14 = vld [vmem:[#allocation3 + $0xa1] sm:$0xff]  ;;  %v333_v16 = vld [vmem:[#allocation3 + $0xa9] sm:$0x3] }
 0x10a   :  { %v491_v57 = vmax.f32 %v471_v48, 0.0  ;;  %569 = vst.msk [vmem:[%s1053_s2 + $0x8] sm:$0x3] %vm241_vm4, %v549_v50  ;;  %v510_v38 = vmin.f32 %v490_v52, 6.0  ;;  %v472_v10 = vmul.f32 0.01010101, %v432_v58  ;;  %v403_v11 = vadd.f32 %v379_v33, %v355_v60 }
 0x10b   :  { %v442_v13 = vadd.f32 %v422_v32, %v402_v61  ;;  %v451_v19 = vld [vmem:[#allocation3 + $0x29] sm:$0x3]  ;;  %v473_v21 = vmul.f32 0.01010101, %v433_v1  ;;  %v346_v22 = vadd.f32 %v947_v2, %v298_v62  ;;  %v356_v25 = vadd.f32 %v949_v14, %v308_v3  ;;  %v300_v51 = vld [vmem:[#allocation3 + $0x60] sm:$0xff] }
 0x10c   :  { %v511_v9 = vmin.f32 %v491_v57, 6.0  ;;  %v530_v18 = vmul.f32 %v510_v38, %v866_v17  ;;  %v492_v27 = vmax.f32 %v472_v10, 0.0  ;;  %v443_v28 = vadd.f32 %v423_v47, %v403_v11  ;;  %v380_v15 = vld [vmem:[#allocation3 + $0xa2] sm:$0xff]  ;;  %v381_v31 = vld [vmem:[#allocation3 + $0xaa] sm:$0x3] }
 0x10d   :  { %v482_v29 = vmul.f32 0.01010101, %v442_v13  ;;  %v493_v36 = vmax.f32 %v473_v21, 0.0  ;;  %v357_v32 = vadd.f32 %v333_v16, %v309_v6  ;;  %v404_v37 = vadd.f32 %v380_v15, %v356_v25  ;;  %v453_v47 = vld [vmem:[#allocation3 + $0x39] sm:$0x3]  ;;  %v965_v62 = vld [vmem:[#allocation3 + $0x61] sm:$0xff] }
 0x10e   :  { %v531_v26 = vmul.f32 %v511_v9, %v451_v19  ;;  %v550_v35 = vmul.f32 0.16666667, %v530_v18  ;;  %v512_v40 = vmin.f32 %v492_v27, 6.0  ;;  %v483_v41 = vmul.f32 0.01010101, %v443_v28  ;;  %v370_v9 = vld [vmem:[#allocation3 + $0x52] sm:$0xff] }
 0x10f   :  { %v502_v42 = vmax.f32 %v482_v29, 0.0  ;;  %v513_v17 = vmin.f32 %v493_v36, 6.0  ;;  %v405_v43 = vadd.f32 %v381_v31, %v357_v32  ;;  %v424_v44 = vadd.f32 %v402_v61, %v900_v8  ;;  %v463_v52 = vld [vmem:[#allocation3 + $0x89] sm:$0x3]  ;;  %v299_v60 = vld [vmem:[#allocation3 + $0x58] sm:$0x3] }
 0x110   :  { %v551_v39 = vmul.f32 0.16666667, %v531_v26  ;;  %570 = vst.msk [vmem:[%s1053_s2 + $0x10] sm:$0xff] %vm198_vm2, %v550_v35  ;;  %v425_v46 = vadd.f32 %v403_v11, %v910_v23  ;;  %v532_v55 = vmul.f32 %v512_v40, %v891_v59  ;;  %v503_v48 = vmax.f32 %v483_v41, 0.0  ;;  %v323_v33 = vld [vmem:[#allocation3 + $0x59] sm:$0x3] }
 0x111   :  { %v522_v49 = vmin.f32 %v502_v42, 6.0  ;;  %v426_v50 = vadd.f32 %v404_v37, %v402_v61  ;;  %v533_v54 = vmul.f32 %v513_v17, %v453_v47  ;;  %v427_v56 = vadd.f32 %v405_v43, %v403_v11  ;;  %v301_v59 = vld [vmem:[#allocation3 + $0x68] sm:$0x3]  ;;  %v371_v15 = vld [vmem:[#allocation3 + $0x5a] sm:$0x3] }
 0x112   :  { %571 = vst.msk [vmem:[%s1053_s2 + $0x18] sm:$0x3] %vm241_vm4, %v551_v39  ;;  %v444_v57 = vadd.f32 %v424_v44, %v404_v37  ;;  %v445_v58 = vadd.f32 %v425_v46, %v405_v43  ;;  %v552_v38 = vmul.f32 0.16666667, %v532_v55  ;;  %v523_v1 = vmin.f32 %v503_v48, 6.0  ;;  %v372_v39 = vld [vmem:[#allocation3 + $0x62] sm:$0xff] }
 0x113   :  { %v542_v3 = vmul.f32 %v522_v49, %v879_v34  ;;  %v446_v6 = vadd.f32 %v426_v50, %v896_v4  ;;  %v553_v10 = vmul.f32 0.16666667, %v533_v54  ;;  %v447_v61 = vadd.f32 %v427_v56, %v916_v30  ;;  %v325_v25 = vld [vmem:[#allocation3 + $0x69] sm:$0x3]  ;;  %v465_v41 = vld [vmem:[#allocation3 + $0x99] sm:$0x3] }
 0x114   :  { %v484_v13 = vmul.f32 0.01010101, %v444_v57  ;;  %v485_v16 = vmul.f32 0.01010101, %v445_v58  ;;  %572 = vst.msk [vmem:[%s1053_s2 + $0x20] sm:$0xff] %vm198_vm2, %v552_v38  ;;  %v543_v11 = vmul.f32 %v523_v1, %v463_v52  ;;  %v347_v21 = vadd.f32 %v323_v33, %v299_v60 }
 0x115   :  { %v562_v19 = vmul.f32 0.16666667, %v542_v3  ;;  %v486_v18 = vmul.f32 0.01010101, %v446_v6  ;;  %573 = vst.msk [vmem:[%s1053_s2 + $0x28] sm:$0x3] %vm241_vm4, %v553_v10  ;;  %v348_v26 = vadd.f32 %v965_v62, %v300_v51  ;;  %v349_v29 = vadd.f32 %v325_v25, %v301_v59 }
 0x116   :  { %v487_v34 = vmul.f32 0.01010101, %v447_v61  ;;  %v504_v4 = vmax.f32 %v484_v13, 0.0  ;;  %v505_v30 = vmax.f32 %v485_v16, 0.0  ;;  %v563_v27 = vmul.f32 0.16666667, %v543_v11 }
 0x117   :  { %582 = vst.msk [vmem:[%s1053_s2 + $0x70] sm:$0xff] %vm198_vm2, %v562_v19  ;;  %v506_v28 = vmax.f32 %v486_v18, 0.0  ;;  %v394_v31 = vadd.f32 %v370_v9, %v346_v22  ;;  %v373_v35 = vld [vmem:[#allocation3 + $0x6a] sm:$0x3]  ;;  %v395_v40 = vadd.f32 %v371_v15, %v347_v21  ;;  %v396_v17 = vadd.f32 %v372_v39, %v348_v26 }
 0x118   :  { %v507_v36 = vmax.f32 %v487_v34, 0.0  ;;  %v524_v32 = vmin.f32 %v504_v4, 6.0  ;;  %v525_v37 = vmin.f32 %v505_v30, 6.0  ;;  %583 = vst.msk [vmem:[%s1053_s2 + $0x78] sm:$0x3] %vm241_vm4, %v563_v27  ;;  %v397_v43 = vadd.f32 %v373_v35, %v349_v29 }
 0x119   :  { %v526_v42 = vmin.f32 %v506_v28, 6.0  ;;  %v416_v44 = vadd.f32 %v394_v31, %v923_v45  ;;  %v417_v55 = vadd.f32 %v395_v40, %v929_v53  ;;  %v467_v48 = vld [vmem:[#allocation3 + $0xa9] sm:$0x3]  ;;  %v418_v50 = vadd.f32 %v396_v17, %v394_v31  ;;  %v457_v27 = vld [vmem:[#allocation3 + $0x59] sm:$0x3] }
 0x11a   :  { %v527_v46 = vmin.f32 %v507_v36, 6.0  ;;  %v544_v22 = vmul.f32 %v524_v32, %v902_v12  ;;  %v545_v47 = vmul.f32 %v525_v37, %v465_v41  ;;  %v419_v51 = vadd.f32 %v397_v43, %v395_v40  ;;  %v455_v25 = vld [vmem:[#allocation3 + $0x49] sm:$0x3]  ;;  %v461_v36 = vld [vmem:[#allocation3 + $0x79] sm:$0x3] }
 0x11b   :  { %v546_v49 = vmul.f32 %v526_v42, %v949_v14  ;;  %v420_v52 = vadd.f32 %v898_v5, %v396_v17  ;;  %v421_v58 = vadd.f32 %v914_v7, %v397_v43  ;;  %v434_v45 = vadd.f32 %v941_v63, %v394_v31  ;;  %v459_v35 = vld [vmem:[#allocation3 + $0x69] sm:$0x3] }
 0x11c   :  { %v547_v54 = vmul.f32 %v527_v46, %v467_v48  ;;  %v564_v56 = vmul.f32 0.16666667, %v544_v22  ;;  %v565_v57 = vmul.f32 0.16666667, %v545_v47  ;;  %v435_v12 = vadd.f32 %v944_v0, %v395_v40 }
 0x11d   :  { %v566_v60 = vmul.f32 0.16666667, %v546_v49  ;;  %v436_v33 = vadd.f32 %v416_v44, %v396_v17  ;;  %v437_v53 = vadd.f32 %v417_v55, %v397_v43  ;;  %v438_v14 = vadd.f32 %v418_v50, %v898_v5 }
 0x11e   :  { %v567_v38 = vmul.f32 0.16666667, %v547_v54  ;;  %584 = vst.msk [vmem:[%s1053_s2 + $0x80] sm:$0xff] %vm198_vm2, %v564_v56  ;;  %v439_v1 = vadd.f32 %v419_v51, %v914_v7  ;;  %v440_v63 = vadd.f32 %v420_v52, %v900_v8  ;;  %v441_v0 = vadd.f32 %v421_v58, %v910_v23 }
 0x11f   :  { %585 = vst.msk [vmem:[%s1053_s2 + $0x88] sm:$0x3] %vm241_vm4, %v565_v57  ;;  %v474_v3 = vmul.f32 0.01010101, %v434_v45  ;;  %v475_v6 = vmul.f32 0.01010101, %v435_v12 }
 0x120   :  { %586 = vst.msk [vmem:[%s1053_s2 + $0x90] sm:$0xff] %vm198_vm2, %v566_v60  ;;  %v476_v59 = vmul.f32 0.01010101, %v436_v33  ;;  %v477_v5 = vmul.f32 0.01010101, %v437_v53 }
 0x121   :  { %587 = vst.msk [vmem:[%s1053_s2 + $0x98] sm:$0x3] %vm241_vm4, %v567_v38  ;;  %v478_v9 = vmul.f32 0.01010101, %v438_v14  ;;  %v479_v7 = vmul.f32 0.01010101, %v439_v1 }
 0x122   :  { %v480_v10 = vmul.f32 0.01010101, %v440_v63  ;;  %v481_v61 = vmul.f32 0.01010101, %v441_v0  ;;  %v494_v13 = vmax.f32 %v474_v3, 0.0  ;;  %v495_v16 = vmax.f32 %v475_v6, 0.0 }
 0x123   :  { %v496_v11 = vmax.f32 %v476_v59, 0.0  ;;  %v497_v19 = vmax.f32 %v477_v5, 0.0  ;;  %v498_v8 = vmax.f32 %v478_v9, 0.0  ;;  %v499_v18 = vmax.f32 %v479_v7, 0.0 }
 0x124   :  { %v500_v23 = vmax.f32 %v480_v10, 0.0  ;;  %v501_v21 = vmax.f32 %v481_v61, 0.0  ;;  %v514_v34 = vmin.f32 %v494_v13, 6.0  ;;  %v515_v4 = vmin.f32 %v495_v16, 6.0 }
 0x125   :  { %v516_v30 = vmin.f32 %v496_v11, 6.0  ;;  %v517_v26 = vmin.f32 %v497_v19, 6.0  ;;  %v518_v28 = vmin.f32 %v498_v8, 6.0  ;;  %v519_v29 = vmin.f32 %v499_v18, 6.0 }
 0x126   :  { %v520_v15 = vmin.f32 %v500_v23, 6.0  ;;  %v521_v31 = vmin.f32 %v501_v21, 6.0  ;;  %v534_v32 = vmul.f32 %v514_v34, %v908_v20  ;;  %v535_v37 = vmul.f32 %v515_v4, %v455_v25 }
 0x127   :  { %v536_v39 = vmul.f32 %v516_v30, %v947_v2  ;;  %v537_v40 = vmul.f32 %v517_v26, %v457_v27  ;;  %v538_v41 = vmul.f32 %v518_v28, %v965_v62  ;;  %v539_v42 = vmul.f32 %v519_v29, %v459_v35 }
 0x128   :  { %v540_v17 = vmul.f32 %v520_v15, %v874_v24  ;;  %v541_v43 = vmul.f32 %v521_v31, %v461_v36  ;;  %v554_v44 = vmul.f32 0.16666667, %v534_v32  ;;  %v555_v46 = vmul.f32 0.16666667, %v535_v37 }
 0x129   :  { %v556_v22 = vmul.f32 0.16666667, %v536_v39  ;;  %v557_v47 = vmul.f32 0.16666667, %v537_v40  ;;  %v558_v55 = vmul.f32 0.16666667, %v538_v41 }
 0x12a   :  { %v559_v48 = vmul.f32 0.16666667, %v539_v42  ;;  %v560_v49 = vmul.f32 0.16666667, %v540_v17  ;;  %v561_v50 = vmul.f32 0.16666667, %v541_v43 }
 0x12b   :  { %574 = vst.msk [vmem:[%s1053_s2 + $0x30] sm:$0xff] %vm198_vm2, %v554_v44  ;;  %576 = vst.msk [vmem:[%s1053_s2 + $0x40] sm:$0xff] %vm198_vm2, %v556_v22 }
 0x12c   :  { %575 = vst.msk [vmem:[%s1053_s2 + $0x38] sm:$0x3] %vm241_vm4, %v555_v46  ;;  %577 = vst.msk [vmem:[%s1053_s2 + $0x48] sm:$0x3] %vm241_vm4, %v557_v47 }
 0x12d   :  { %578 = vst.msk [vmem:[%s1053_s2 + $0x50] sm:$0xff] %vm198_vm2, %v558_v55  ;;  %580 = vst.msk [vmem:[%s1053_s2 + $0x60] sm:$0xff] %vm198_vm2, %v560_v49 }
 0x12e   :  { %579 = vst.msk [vmem:[%s1053_s2 + $0x58] sm:$0x3] %vm241_vm4, %v559_v48  ;;  %581 = vst.msk [vmem:[%s1053_s2 + $0x68] sm:$0x3] %vm241_vm4, %v561_v50 }

</bundles_post_ra>
